<compile_context>
chip_gen: v6e
topology: v6e:2x2x1
jax: 0.10.0
libtpu: 0.0.40
codegen_flags: <defaults>
</compile_context>

<pallas_src>
import functools

import jax
import jax.numpy as jnp
from jax.experimental import pallas as pl
from jax.experimental.pallas import tpu as pltpu

LANE = 128                                # vreg lane width; feature dims padded to this
FUSED_VMEM_BUDGET = 8 * 1024 * 1024       # raw-buffer budget for the fully fused path


def _round_up(x, m):
    return ((x + m - 1) // m) * m


def _pad2(a, rows, cols):
    return jnp.pad(a, ((0, rows - a.shape[0]), (0, cols - a.shape[1])))


# ---------------------------------------------------------------------------
# Fully fused block: all three layers in a single kernel, everything resident
# in VMEM, chained MXU matmuls, f32 throughout.
# ---------------------------------------------------------------------------
def _fused_gcnn_kernel(adj_ref, x_ref, w1_ref, b1_ref, w2_ref, b2_ref,
                       w3_ref, b3_ref, o_ref):
    f32 = jnp.float32
    adj = adj_ref[...]

    h = jnp.dot(x_ref[...], w1_ref[...], preferred_element_type=f32)
    h = jnp.maximum(jnp.dot(adj, h, preferred_element_type=f32) + b1_ref[...], 0.0)
    # TODO(synk): dropout(p) skipped -- module evaluated in eval mode (identity).
    h = jnp.dot(h, w2_ref[...], preferred_element_type=f32)
    h = jnp.maximum(jnp.dot(adj, h, preferred_element_type=f32) + b2_ref[...], 0.0)
    h = jnp.dot(h, w3_ref[...], preferred_element_type=f32)
    o_ref[...] = (jnp.dot(adj, h, preferred_element_type=f32)
                  + b3_ref[...]).astype(o_ref.dtype)


def _fused_gcnn(adj, x, w1, b1, w2, b2, w3, b3):
    n = adj.shape[0]
    fin_p, f1_p = w1.shape
    f2_p = w2.shape[1]
    f3_p = w3.shape[1]
    args = (adj, x, w1, b1, w2, b2, w3, b3)

    def full_spec(a):
        nd = a.ndim
        # Full-array block (block_shape == array shape is always legal).
        return pl.BlockSpec(a.shape, lambda *_i, _nd=nd: (0,) * _nd)

    flops = 2 * n * (fin_p * f1_p + n * f1_p + f1_p * f2_p + n * f2_p
                     + f2_p * f3_p + n * f3_p)
    bytes_accessed = sum(int(a.size * a.dtype.itemsize) for a in args) + n * f3_p * 4

    return pl.pallas_call(
        _fused_gcnn_kernel,
        out_shape=jax.ShapeDtypeStruct((n, f3_p), jnp.float32),
        grid=(1,),
        in_specs=[full_spec(a) for a in args],
        out_specs=pl.BlockSpec((n, f3_p), lambda i: (0, 0)),
        compiler_params=pltpu.CompilerParams(
            dimension_semantics=("arbitrary",),
            vmem_limit_bytes=32 << 20),   # safe on v5e/v6e (128 MiB) and v7x (64 MiB)
        cost_estimate=pl.CostEstimate(flops=flops, transcendentals=0,
                                      bytes_accessed=bytes_accessed),
    )(*args)


# ---------------------------------------------------------------------------
# Scalable fallback (large N): one kernel per layer.
#   out = act((sum_k A[i,k] @ H[k,:]) @ W + b)     -- weight multiply folded
#   into the aggregation epilogue, W/bias VMEM-resident, bf16 operands,
#   f32 accumulator, reduction axis last.
# ---------------------------------------------------------------------------
def _gcn_layer_kernel(adj_ref, h_ref, w_ref, b_ref, o_ref, acc_ref, *, apply_relu):
    k = pl.program_id(1)

    @pl.when(k == 0)
    def _():
        acc_ref[...] = jnp.zeros_like(acc_ref)

    acc_ref[...] += jnp.dot(adj_ref[...], h_ref[...],
                            preferred_element_type=jnp.float32)

    @pl.when(k == pl.num_programs(1) - 1)
    def _():
        agg = acc_ref[...].astype(w_ref.dtype)
        out = jnp.dot(agg, w_ref[...], preferred_element_type=jnp.float32)
        out = out + b_ref[...]
        if apply_relu:
            out = jnp.maximum(out, 0.0)
        o_ref[...] = out.astype(o_ref.dtype)


def _gcn_layer(adj, h, w, b, *, apply_relu, out_dtype, tm, tk):
    n = adj.shape[0]
    fin_p, fout_p = w.shape
    assert n % tm == 0 and n % tk == 0, (n, tm, tk)
    nm, nk = n // tm, n // tk
    kernel = functools.partial(_gcn_layer_kernel, apply_relu=apply_relu)

    flops = 2 * n * n * fin_p + 2 * n * fin_p * fout_p
    bytes_accessed = int(adj.size * adj.dtype.itemsize + h.size * h.dtype.itemsize
                         + w.size * w.dtype.itemsize + b.size * 4
                         + n * fout_p * jnp.dtype(out_dtype).itemsize)

    return pl.pallas_call(
        kernel,
        out_shape=jax.ShapeDtypeStruct((n, fout_p), out_dtype),
        grid_spec=pltpu.PrefetchScalarGridSpec(
            num_scalar_prefetch=0,
            grid=(nm, nk),
            in_specs=[
                pl.BlockSpec((tm, tk), lambda i, kk: (i, kk)),        # A_hat tile
                pl.BlockSpec((tk, fin_p), lambda i, kk: (kk, 0)),     # H row tile
                pl.BlockSpec((fin_p, fout_p), lambda i, kk: (0, 0)),  # W (resident)
                pl.BlockSpec((1, fout_p), lambda i, kk: (0, 0)),      # bias (resident)
            ],
            out_specs=pl.BlockSpec((tm, fout_p), lambda i, kk: (i, 0)),
            scratch_shapes=[pltpu.VMEM((tm, fin_p), jnp.float32)],
        ),
        compiler_params=pltpu.CompilerParams(
            dimension_semantics=("parallel", "arbitrary")),
        cost_estimate=pl.CostEstimate(flops=flops, transcendentals=0,
                                      bytes_accessed=bytes_accessed),
    )(adj, h, w, b)


# ---------------------------------------------------------------------------
# Module setup: pad/cast parameters and A_hat ONCE, return a jitted forward.
# ---------------------------------------------------------------------------
def make_gcnn_block(adj, w1, b1, w2, b2, w3, b3, *, tm=256, tk=256):
    n = adj.shape[0]
    fin, f1 = w1.shape
    f2, f3 = w2.shape[1], w3.shape[1]
    fin_p, f1_p, f2_p, f3_p = (_round_up(d, LANE) for d in (fin, f1, f2, f3))

    # Raw-buffer footprint of the fully fused path (f32 everywhere, plus a
    # couple of n x F intermediates worth of headroom).
    fused_bytes = 4 * (n * n + n * fin_p + fin_p * f1_p + f1_p * f2_p
                       + f2_p * f3_p + 3 * n * max(f1_p, f2_p, f3_p))
    use_fused = fused_bytes <= FUSED_VMEM_BUDGET

    if use_fused:
        # f32 throughout: intermediates never leave VMEM so there is no
        # bandwidth reason to drop to bf16, and the A_hat normalization stays exact.
        adj_c = adj.astype(jnp.float32)
        w1_p = _pad2(w1, fin_p, f1_p).astype(jnp.float32)
        w2_p = _pad2(w2, f1_p, f2_p).astype(jnp.float32)
        w3_p = _pad2(w3, f2_p, f3_p).astype(jnp.float32)
        b1_p = _pad2(b1.reshape(1, -1), 1, f1_p).astype(jnp.float32)
        b2_p = _pad2(b2.reshape(1, -1), 1, f2_p).astype(jnp.float32)
        b3_p = _pad2(b3.reshape(1, -1), 1, f3_p).astype(jnp.float32)

        @jax.jit
        def forward(x):
            x_p = _pad2(x, n, fin_p).astype(jnp.float32)
            y = _fused_gcnn(adj_c, x_p, w1_p, b1_p, w2_p, b2_p, w3_p, b3_p)
            return y[:, :f3]

        return forward

    # --- large-N fallback: one fused (aggregate @ W + b, relu) kernel per layer.
    bf = jnp.bfloat16
    n_pad = _round_up(_round_up(n, tm), tk)
    adj_c = _pad2(adj, n_pad, n_pad).astype(bf)
    w1_p = _pad2(w1, fin_p, f1_p).astype(bf)
    w2_p = _pad2(w2, f1_p, f2_p).astype(bf)
    w3_p = _pad2(w3, f2_p, f3_p).astype(bf)
    b1_p = _pad2(b1.reshape(1, -1), 1, f1_p).astype(jnp.float32)
    b2_p = _pad2(b2.reshape(1, -1), 1, f2_p).astype(jnp.float32)
    b3_p = _pad2(b3.reshape(1, -1), 1, f3_p).astype(jnp.float32)

    @jax.jit
    def forward(x):
        x_p = _pad2(x, n_pad, fin_p).astype(bf)
        # Note: padded rows of H hold relu(b) != 0 after layers 1/2, but the
        # corresponding columns of padded A_hat are zero, so real rows are
        # never contaminated (checked; keep this invariant if retiling).
        h = _gcn_layer(adj_c, x_p, w1_p, b1_p, apply_relu=True,
                       out_dtype=bf, tm=tm, tk=tk)
        h = _gcn_layer(adj_c, h, w2_p, b2_p, apply_relu=True,
                       out_dtype=bf, tm=tm, tk=tk)
        y = _gcn_layer(adj_c, h, w3_p, b3_p, apply_relu=False,
                       out_dtype=jnp.float32, tm=tm, tk=tk)
        return y[:n, :f3]

    return forward


# ---------------------------------------------------------------------------
# Graph preprocessing (static graph -> built once, outside the hot path).
# ---------------------------------------------------------------------------
def build_normalized_adjacency(edge_index, num_nodes):
    """Dense A_hat = D^{-1/2}(A + I)D^{-1/2}, matching PyG GCNConv defaults.

    Uses .add so duplicate edges each contribute a message (PyG multigraph parity).
    """
    src, dst = edge_index[0], edge_index[1]
    adj = jnp.zeros((num_nodes, num_nodes), jnp.float32)
    # message passing: out[dst] += norm * x[src]  ->  dense row = dst, col = src
    adj = adj.at[dst, src].add(1.0)
    adj = adj + jnp.eye(num_nodes, dtype=jnp.float32)        # self-loops
    deg = jnp.sum(adj, axis=1)
    dinv = jnp.where(deg > 0, 1.0 / jnp.sqrt(deg), 0.0)
    return adj * dinv[:, None] * dinv[None, :]


def reference(adj, x, w1, b1, w2, b2, w3, b3):
    h = jnp.maximum(adj @ (x @ w1) + b1, 0.0)
    h = jnp.maximum(adj @ (h @ w2) + b2, 0.0)
    return adj @ (h @ w3) + b3


if __name__ == "__main__":
    # Module config
    in_features = 16
    args = {"filters_1": 32, "filters_2": 16, "filters_3": 8, "dropout": 0.5}
    num_nodes = 32

    key = jax.random.PRNGKey(0)
    kx, ke, k1, k2, k3 = jax.random.split(key, 5)

    # Node features and a deterministic random edge_index (2, E)
    x = jax.random.normal(kx, (num_nodes, in_features), jnp.float32)
    num_edges = 64
    edge_index = jax.random.randint(ke, (2, num_edges), 0, num_nodes, jnp.int32)

    # A_hat is loop-invariant for a static graph: built once, outside the hot path.
    adj = build_normalized_adjacency(edge_index, num_nodes)

    def glorot(k, fan_in, fan_out):
        lim = jnp.sqrt(6.0 / (fan_in + fan_out))
        return jax.random.uniform(k, (fan_in, fan_out), jnp.float32, -lim, lim)

    w1 = glorot(k1, in_features, args["filters_1"])
    b1 = jnp.zeros((1, args["filters_1"]), jnp.float32)
    w2 = glorot(k2, args["filters_1"], args["filters_2"])
    b2 = jnp.zeros((1, args["filters_2"]), jnp.float32)
    w3 = glorot(k3, args["filters_2"], args["filters_3"])
    b3 = jnp.zeros((1, args["filters_3"]), jnp.float32)

    # Parameters padded/cast once; forward is jitted and, at this size, runs
    # the whole block as a single fused pallas_call.
    forward = make_gcnn_block(adj, w1, b1, w2, b2, w3, b3)

    out = jax.block_until_ready(forward(x))

    ref = reference(adj, x, w1, b1, w2, b2, w3, b3)
    assert out.shape == (num_nodes, args["filters_3"]), out.shape
    err = float(jnp.max(jnp.abs(out - ref)))
    scale = float(jnp.max(jnp.abs(ref)))
    # f32 operands with f32 MXU accumulation -> tight tolerance.
    assert err <= 1e-2 * scale + 1e-3, (err, scale)

    print("KERNEL_OK")
</pallas_src>

<mosaic_0001>
module attributes {stable_mosaic.version = 11 : i64} {
  func.func @_fused_gcnn_kernel(%arg0: i32, %arg1: memref<32x32xf32, #tpu.memory_space<vmem>>, %arg2: memref<32x128xf32, #tpu.memory_space<vmem>>, %arg3: memref<128x128xf32, #tpu.memory_space<vmem>>, %arg4: memref<1x128xf32, #tpu.memory_space<vmem>>, %arg5: memref<128x128xf32, #tpu.memory_space<vmem>>, %arg6: memref<1x128xf32, #tpu.memory_space<vmem>>, %arg7: memref<128x128xf32, #tpu.memory_space<vmem>>, %arg8: memref<1x128xf32, #tpu.memory_space<vmem>>, %arg9: memref<32x128xf32, #tpu.memory_space<vmem>>) attributes {dimension_semantics = [#tpu.dimension_semantics<arbitrary>], iteration_bounds = array<i64: 1>, scalar_prefetch = 0 : i64, scratch_operands = 0 : i64, tpu.core_type = #tpu.core_type<tc>, window_params = [{pipeline_mode = #tpu.pipeline_mode<synchronous>, transform_indices = @transform_0, window_bounds = array<i64: 32, 32>}, {pipeline_mode = #tpu.pipeline_mode<synchronous>, transform_indices = @transform_1, window_bounds = array<i64: 32, 128>}, {pipeline_mode = #tpu.pipeline_mode<synchronous>, transform_indices = @transform_2, window_bounds = array<i64: 128, 128>}, {pipeline_mode = #tpu.pipeline_mode<synchronous>, transform_indices = @transform_3, window_bounds = array<i64: 1, 128>}, {pipeline_mode = #tpu.pipeline_mode<synchronous>, transform_indices = @transform_4, window_bounds = array<i64: 128, 128>}, {pipeline_mode = #tpu.pipeline_mode<synchronous>, transform_indices = @transform_5, window_bounds = array<i64: 1, 128>}, {pipeline_mode = #tpu.pipeline_mode<synchronous>, transform_indices = @transform_6, window_bounds = array<i64: 128, 128>}, {pipeline_mode = #tpu.pipeline_mode<synchronous>, transform_indices = @transform_7, window_bounds = array<i64: 1, 128>}, {pipeline_mode = #tpu.pipeline_mode<synchronous>, transform_indices = @transform_8, window_bounds = array<i64: 32, 128>}]} {
    %c0 = arith.constant 0 : index
    %c0_0 = arith.constant 0 : index
    %0 = vector.load %arg1[%c0, %c0_0] : memref<32x32xf32, #tpu.memory_space<vmem>>, vector<32x32xf32>
    %c0_1 = arith.constant 0 : index
    %c0_2 = arith.constant 0 : index
    %1 = vector.load %arg2[%c0_1, %c0_2] : memref<32x128xf32, #tpu.memory_space<vmem>>, vector<32x128xf32>
    %c0_3 = arith.constant 0 : index
    %c0_4 = arith.constant 0 : index
    %2 = vector.load %arg3[%c0_3, %c0_4] : memref<128x128xf32, #tpu.memory_space<vmem>>, vector<128x128xf32>
    %cst = arith.constant dense<0.000000e+00> : vector<32x128xf32>
    %3 = tpu.matmul %1, %2, %cst {dimension_numbers = #tpu.dot_dimension_numbers<[1], [0], [0], [1], [0, 0, 1, 1], [], []>} : vector<32x128xf32>, vector<128x128xf32>, vector<32x128xf32> -> vector<32x128xf32>
    %cst_5 = arith.constant dense<0.000000e+00> : vector<32x128xf32>
    %4 = tpu.matmul %0, %3, %cst_5 {dimension_numbers = #tpu.dot_dimension_numbers<[1], [0], [0], [1], [0, 0, 1, 1], [], []>} : vector<32x32xf32>, vector<32x128xf32>, vector<32x128xf32> -> vector<32x128xf32>
    %c0_6 = arith.constant 0 : index
    %c0_7 = arith.constant 0 : index
    %5 = vector.load %arg4[%c0_6, %c0_7] : memref<1x128xf32, #tpu.memory_space<vmem>>, vector<1x128xf32>
    %6 = vector.broadcast %5 : vector<1x128xf32> to vector<32x128xf32>
    %7 = arith.addf %4, %6 : vector<32x128xf32>
    %cst_8 = arith.constant 0.000000e+00 : f32
    %8 = vector.broadcast %cst_8 : f32 to vector<32x128xf32>
    %9 = arith.maximumf %7, %8 : vector<32x128xf32>
    %c0_9 = arith.constant 0 : index
    %c0_10 = arith.constant 0 : index
    %10 = vector.load %arg5[%c0_9, %c0_10] : memref<128x128xf32, #tpu.memory_space<vmem>>, vector<128x128xf32>
    %cst_11 = arith.constant dense<0.000000e+00> : vector<32x128xf32>
    %11 = tpu.matmul %9, %10, %cst_11 {dimension_numbers = #tpu.dot_dimension_numbers<[1], [0], [0], [1], [0, 0, 1, 1], [], []>} : vector<32x128xf32>, vector<128x128xf32>, vector<32x128xf32> -> vector<32x128xf32>
    %cst_12 = arith.constant dense<0.000000e+00> : vector<32x128xf32>
    %12 = tpu.matmul %0, %11, %cst_12 {dimension_numbers = #tpu.dot_dimension_numbers<[1], [0], [0], [1], [0, 0, 1, 1], [], []>} : vector<32x32xf32>, vector<32x128xf32>, vector<32x128xf32> -> vector<32x128xf32>
    %c0_13 = arith.constant 0 : index
    %c0_14 = arith.constant 0 : index
    %13 = vector.load %arg6[%c0_13, %c0_14] : memref<1x128xf32, #tpu.memory_space<vmem>>, vector<1x128xf32>
    %14 = vector.broadcast %13 : vector<1x128xf32> to vector<32x128xf32>
    %15 = arith.addf %12, %14 : vector<32x128xf32>
    %cst_15 = arith.constant 0.000000e+00 : f32
    %16 = vector.broadcast %cst_15 : f32 to vector<32x128xf32>
    %17 = arith.maximumf %15, %16 : vector<32x128xf32>
    %c0_16 = arith.constant 0 : index
    %c0_17 = arith.constant 0 : index
    %18 = vector.load %arg7[%c0_16, %c0_17] : memref<128x128xf32, #tpu.memory_space<vmem>>, vector<128x128xf32>
    %cst_18 = arith.constant dense<0.000000e+00> : vector<32x128xf32>
    %19 = tpu.matmul %17, %18, %cst_18 {dimension_numbers = #tpu.dot_dimension_numbers<[1], [0], [0], [1], [0, 0, 1, 1], [], []>} : vector<32x128xf32>, vector<128x128xf32>, vector<32x128xf32> -> vector<32x128xf32>
    %cst_19 = arith.constant dense<0.000000e+00> : vector<32x128xf32>
    %20 = tpu.matmul %0, %19, %cst_19 {dimension_numbers = #tpu.dot_dimension_numbers<[1], [0], [0], [1], [0, 0, 1, 1], [], []>} : vector<32x32xf32>, vector<32x128xf32>, vector<32x128xf32> -> vector<32x128xf32>
    %c0_20 = arith.constant 0 : index
    %c0_21 = arith.constant 0 : index
    %21 = vector.load %arg8[%c0_20, %c0_21] : memref<1x128xf32, #tpu.memory_space<vmem>>, vector<1x128xf32>
    %22 = vector.broadcast %21 : vector<1x128xf32> to vector<32x128xf32>
    %23 = arith.addf %20, %22 : vector<32x128xf32>
    %c0_22 = arith.constant 0 : index
    %c0_23 = arith.constant 0 : index
    %24 = vector.load %arg9[%c0_22, %c0_23] : memref<32x128xf32, #tpu.memory_space<vmem>>, vector<32x128xf32>
    tpu.vector_store %arg9[%c0_22, %c0_23], %23 {strides = array<i32>} : memref<32x128xf32, #tpu.memory_space<vmem>>, vector<32x128xf32>,
    return
  }
  func.func @transform_0(%arg0: i32) -> (i32, i32) {
    %c0_i32 = arith.constant 0 : i32
    %c0_i32_0 = arith.constant 0 : i32
    %c0_i32_1 = arith.constant 0 : i32
    return %c0_i32, %c0_i32_0 : i32, i32
  }
  func.func @transform_1(%arg0: i32) -> (i32, i32) {
    %c0_i32 = arith.constant 0 : i32
    %c0_i32_0 = arith.constant 0 : i32
    %c0_i32_1 = arith.constant 0 : i32
    return %c0_i32, %c0_i32_0 : i32, i32
  }
  func.func @transform_2(%arg0: i32) -> (i32, i32) {
    %c0_i32 = arith.constant 0 : i32
    %c0_i32_0 = arith.constant 0 : i32
    %c0_i32_1 = arith.constant 0 : i32
    return %c0_i32, %c0_i32_0 : i32, i32
  }
  func.func @transform_3(%arg0: i32) -> (i32, i32) {
    %c0_i32 = arith.constant 0 : i32
    %c0_i32_0 = arith.constant 0 : i32
    %c0_i32_1 = arith.constant 0 : i32
    return %c0_i32, %c0_i32_0 : i32, i32
  }
  func.func @transform_4(%arg0: i32) -> (i32, i32) {
    %c0_i32 = arith.constant 0 : i32
    %c0_i32_0 = arith.constant 0 : i32
    %c0_i32_1 = arith.constant 0 : i32
    return %c0_i32, %c0_i32_0 : i32, i32
  }
  func.func @transform_5(%arg0: i32) -> (i32, i32) {
    %c0_i32 = arith.constant 0 : i32
    %c0_i32_0 = arith.constant 0 : i32
    %c0_i32_1 = arith.constant 0 : i32
    return %c0_i32, %c0_i32_0 : i32, i32
  }
  func.func @transform_6(%arg0: i32) -> (i32, i32) {
    %c0_i32 = arith.constant 0 : i32
    %c0_i32_0 = arith.constant 0 : i32
    %c0_i32_1 = arith.constant 0 : i32
    return %c0_i32, %c0_i32_0 : i32, i32
  }
  func.func @transform_7(%arg0: i32) -> (i32, i32) {
    %c0_i32 = arith.constant 0 : i32
    %c0_i32_0 = arith.constant 0 : i32
    %c0_i32_1 = arith.constant 0 : i32
    return %c0_i32, %c0_i32_0 : i32, i32
  }
  func.func @transform_8(%arg0: i32) -> (i32, i32) {
    %c0_i32 = arith.constant 0 : i32
    %c0_i32_0 = arith.constant 0 : i32
    %c0_i32_1 = arith.constant 0 : i32
    return %c0_i32, %c0_i32_0 : i32, i32
  }
}

</mosaic_0001>

<bundles_post_ra>
// kernel: forward.1
= control target key start
LH: loop header
LB: loop body
LE: loop exit
PB: predicated region body
PF: predicated region fallthrough
CT: control target
= control target key end

     0   :  { %13 = vsyncpa [#allocation3], 0  ;;  %s1148_s0 = inlined_call_operand.vmem [shape: f32[32,32], index: 0, kind: input, shape index: {}]   ;;  %s1149_s1 = inlined_call_operand.vmem [shape: f32[32,128], index: 1, kind: input, shape index: {}]   ;;  %s1150_s2 = inlined_call_operand.hbm [shape: f32[128,128], index: 2, kind: input, shape index: {}]   ;;  %s1151_s3 = inlined_call_operand.vmem [shape: f32[1,128], index: 3, kind: input, shape index: {}, may-alias: {3,5,7}]   ;;  %s1152_s4 = inlined_call_operand.hbm [shape: f32[128,128], index: 4, kind: input, shape index: {}]   ;;  %s1153_s5 = inlined_call_operand.vmem [shape: f32[1,128], index: 5, kind: input, shape index: {}, may-alias: {3,5,7}]   ;;  %s1154_s6 = inlined_call_operand.hbm [shape: f32[128,128], index: 6, kind: input, shape index: {}]   ;;  %s1155_s7 = inlined_call_operand.vmem [shape: f32[1,128], index: 7, kind: input, shape index: {}, may-alias: {3,5,7}]   ;;  %s1156_s8 = inlined_call_operand.vmem [shape: f32[32,128], index: 8, kind: output, shape index: {}]  }
   0x1   :  { %14 = vsyncpa [#allocation5], 0  ;;  %s1012_s27 = smov [#allocation4]   ;;  %s1013_s29 = smov [#allocation2]  }
   0x2   :  { %s38_s28 = sshll.u32 %s1012_s27, 4  ;;  %s24_s30 = sshll.u32 %s1013_s29, 4  ;;  %s39_s28 = int_to_ptr.vmem [resolvable:$true] %s38_s28  ;;  %s25_s30 = int_to_ptr.vmem [resolvable:$true] %s24_s30 }
   0x3   :  { %s956_s9 = scalar_lea.vmem %s39_s28, 2048  ;;  %p961_p1 = scmp.lt.s32.totalorder %s39_s28, %s39_s28 }
   0x4   :  { %p957_p0 = scmp.ne.s32.totalorder %s39_s28, %s956_s9  ;;  %p962_p2 = scmp.lt.s32.totalorder %s956_s9, %s956_s9 }
   0x6   :  { %p963_p3 = por %p962_p2, %p961_p1 }
   0x8   :  { %p964_p4 = pnand %p963_p3, %p957_p0 }
   0xa   :  { %967 = shalt.err (!%p964_p4)
}
   0xb   :  { %s1014_s10 = smov 128   ;;  %s1015_s11 = smov 8  }
   0xc   :  { %44 = dma.hbm_to_vmem [thread:$0]  %s1152_s4, 2048, %s39_s28, [#allocation5], %s1014_s10, %s1014_s10, %s1015_s11  }
   0xd   :  { %s976_s14 = scalar_lea.vmem %s25_s30, 2048  ;;  %p981_p6 = scmp.lt.s32.totalorder %s25_s30, %s25_s30 }
   0xe   :  { %p977_p5 = scmp.ne.s32.totalorder %s25_s30, %s976_s14  ;;  %p982_p7 = scmp.lt.s32.totalorder %s976_s14, %s976_s14 }
  0x10   :  { %p983_p8 = por %p982_p7, %p981_p6 }
  0x12   :  { %p984_p9 = pnand %p983_p8, %p977_p5 }
  0x14   :  { %987 = shalt.err (!%p984_p9)
}
  0x15   :  { %30 = dma.hbm_to_vmem [thread:$0]  %s1150_s2, 2048, %s25_s30, [#allocation3], %s1014_s10, %s1014_s10, %s1015_s11  }
  0x16   :  { %s1016_s17 = smov [#allocation6]  }
  0x17   :  { %s52_s18 = sshll.u32 %s1016_s17, 4  ;;  %s53_s18 = int_to_ptr.vmem [resolvable:$true] %s52_s18 }
  0x18   :  { %s996_s19 = scalar_lea.vmem %s53_s18, 2048  ;;  %p1001_p11 = scmp.lt.s32.totalorder %s53_s18, %s53_s18 }
  0x19   :  { %p997_p10 = scmp.ne.s32.totalorder %s53_s18, %s996_s19  ;;  %p1002_p12 = scmp.lt.s32.totalorder %s996_s19, %s996_s19 }
  0x1b   :  { %p1003_p13 = por %p1002_p12, %p1001_p11 }
  0x1d   :  { %p1004_p0 = pnand %p1003_p13, %p997_p10 }
  0x1f   :  { %1007 = shalt.err (!%p1004_p0)
}
  0x20   :  { %58 = dma.hbm_to_vmem [thread:$0]  %s1154_s6, 2048, %s53_s18, [#allocation5], %s1014_s10, %s1014_s10, %s1015_s11  }
  0x21   :  { %1008 = dma.done.wait [#allocation3], 2048  }
  0x22   :  { %1009 = vsyncadd [#allocation3], 4294965248 }
  0x23   :  { %1010 = dma.done.wait [#allocation5], 4096  }
  0x24   :  { %1011 = vsyncadd [#allocation5], 4294963200  ;;  %v93_v0 = vld [vmem:[#allocation2 + $0x78] sm:$0xff]  ;;  %v92_v1 = vld [vmem:[#allocation2 + $0x70] sm:$0xff]  ;;  %vm186_vm0 = vcmask 261120  }
  0x25   :  { %787 = vmatprep.subr.mxu0 %v93_v0  ;;  %v91_v2 = vld [vmem:[#allocation2 + $0x68] sm:$0xff]  ;;  %v90_v3 = vld [vmem:[#allocation2 + $0x60] sm:$0xff]  ;;  %v89_v5 = vld [vmem:[#allocation2 + $0x58] sm:$0xff] }
  0x26   :  { %788 = vmatpush3.msra.mxu0 %v93_v0  ;;  %v74_v4 = vld [vmem:[%s1149_s1] sm:$0xff]  ;;  %v88_v6 = vld [vmem:[#allocation2 + $0x50] sm:$0xff]  ;;  %v87_v7 = vld [vmem:[#allocation2 + $0x48] sm:$0xff] }
  0x27   :  { %789 = vmatprep.subr.mxu0 %v92_v1  ;;  %819 = vmatprep.mubr.f32.mxu0 %v74_v4  ;;  %v86_v8 = vld [vmem:[#allocation2 + $0x40] sm:$0xff]  ;;  %v85_v9 = vld [vmem:[#allocation2 + $0x38] sm:$0xff]  ;;  %v84_v10 = vld [vmem:[#allocation2 + $0x30] sm:$0xff] }
  0x28   :  { %790 = vmatpush3.msra.mxu0 %v92_v1  ;;  %v83_v11 = vld [vmem:[#allocation2 + $0x28] sm:$0xff]  ;;  %v82_v12 = vld [vmem:[#allocation2 + $0x20] sm:$0xff]  ;;  %v81_v13 = vld [vmem:[#allocation2 + $0x18] sm:$0xff] }
  0x29   :  { %791 = vmatprep.subr.mxu0 %v91_v2  ;;  %v80_v14 = vld [vmem:[#allocation2 + $0x10] sm:$0xff]  ;;  %v79_v15 = vld [vmem:[#allocation2 + $0x8] sm:$0xff]  ;;  %v78_v16 = vld [vmem:[#allocation2] sm:$0xff] }
  0x2a   :  { %792 = vmatpush3.msra.mxu0 %v91_v2  ;;  %v75_v17 = vld [vmem:[%s1149_s1 + $0x8] sm:$0xff]  ;;  %v76_v18 = vld [vmem:[%s1149_s1 + $0x10] sm:$0xff]  ;;  %v77_v19 = vld [vmem:[%s1149_s1 + $0x18] sm:$0xff] }
  0x2b   :  { %793 = vmatprep.subr.mxu0 %v90_v3  ;;  %v1086_v20 = vld [vmem:[%s1148_s0] sm:$0xff]  ;;  %v1093_v25 = vld [vmem:[%s1148_s0 + $0x8] sm:$0xff]  ;;  %v303_v26 = vld [vmem:[#allocation4 + $0x78] sm:$0xff] }
  0x2c   :  { %794 = vmatpush3.msra.mxu0 %v90_v3  ;;  %833 = vmatprep.mubr.msk.f32.mxu1 %vm186_vm0, %v1086_v20  ;;  %v1098_v27 = vld [vmem:[%s1148_s0 + $0x10] sm:$0xff]  ;;  %v1107_v29 = vld [vmem:[%s1148_s0 + $0x18] sm:$0xff]  ;;  %v301_v30 = vld [vmem:[#allocation4 + $0x68] sm:$0xff] }
  0x2d   :  { %795 = vmatprep.subr.mxu0 %v89_v5  ;;  %v302_v28 = vld [vmem:[#allocation4 + $0x70] sm:$0xff]  ;;  %v300_v31 = vld [vmem:[#allocation4 + $0x60] sm:$0xff]  ;;  %v299_v32 = vld [vmem:[#allocation4 + $0x58] sm:$0xff] }
  0x2e   :  { %796 = vmatpush3.msra.mxu0 %v89_v5  ;;  %v298_v33 = vld [vmem:[#allocation4 + $0x50] sm:$0xff]  ;;  %v297_v34 = vld [vmem:[#allocation4 + $0x48] sm:$0xff]  ;;  %v296_v35 = vld [vmem:[#allocation4 + $0x40] sm:$0xff] }
  0x2f   :  { %797 = vmatprep.subr.mxu0 %v88_v6  ;;  %v295_v36 = vld [vmem:[#allocation4 + $0x38] sm:$0xff]  ;;  %v294_v37 = vld [vmem:[#allocation4 + $0x30] sm:$0xff]  ;;  %v293_v38 = vld [vmem:[#allocation4 + $0x28] sm:$0xff] }
  0x30   :  { %798 = vmatpush3.msra.mxu0 %v88_v6  ;;  %v292_v39 = vld [vmem:[#allocation4 + $0x20] sm:$0xff]  ;;  %v291_v40 = vld [vmem:[#allocation4 + $0x18] sm:$0xff]  ;;  %v290_v41 = vld [vmem:[#allocation4 + $0x10] sm:$0xff] }
  0x31   :  { %799 = vmatprep.subr.mxu0 %v87_v7  ;;  %v289_v42 = vld [vmem:[#allocation4 + $0x8] sm:$0xff]  ;;  %v288_v43 = vld [vmem:[#allocation4] sm:$0xff]  ;;  %v500_v57 = vld [vmem:[#allocation6 + $0x78] sm:$0xff] }
  0x32   :  { %800 = vmatpush3.msra.mxu0 %v87_v7  ;;  %v688_v44 = vld [vmem:[%s1151_s3] ss:$0 sm:$0xff]  ;;  %v499_v58 = vld [vmem:[#allocation6 + $0x70] sm:$0xff]  ;;  %v498_v59 = vld [vmem:[#allocation6 + $0x68] sm:$0xff] }
  0x33   :  { %801 = vmatprep.subr.mxu0 %v86_v8  ;;  %v497_v60 = vld [vmem:[#allocation6 + $0x60] sm:$0xff]  ;;  %v496_v61 = vld [vmem:[#allocation6 + $0x58] sm:$0xff]  ;;  %v495_v62 = vld [vmem:[#allocation6 + $0x50] sm:$0xff] }
  0x34   :  { %802 = vmatpush3.msra.mxu0 %v86_v8  ;;  %v494_v63 = vld [vmem:[#allocation6 + $0x48] sm:$0xff]  ;;  %v493_v0 = vld [vmem:[#allocation6 + $0x40] sm:$0xff]  ;;  %v492_v1 = vld [vmem:[#allocation6 + $0x38] sm:$0xff] }
  0x35   :  { %803 = vmatprep.subr.mxu0 %v85_v9  ;;  %v491_v2 = vld [vmem:[#allocation6 + $0x30] sm:$0xff]  ;;  %v490_v3 = vld [vmem:[#allocation6 + $0x28] sm:$0xff]  ;;  %v489_v4 = vld [vmem:[#allocation6 + $0x20] sm:$0xff] }
  0x36   :  { %804 = vmatpush3.msra.mxu0 %v85_v9  ;;  %v488_v9 = vld [vmem:[#allocation6 + $0x18] sm:$0xff] }
  0x37   :  { %805 = vmatprep.subr.mxu0 %v84_v10 }
  0x38   :  { %806 = vmatpush3.msra.mxu0 %v84_v10  ;;  %v487_v10 = vld [vmem:[#allocation6 + $0x10] sm:$0xff] }
  0x39   :  { %807 = vmatprep.subr.mxu0 %v83_v11 }
  0x3a   :  { %808 = vmatpush3.msra.mxu0 %v83_v11  ;;  %v486_v11 = vld [vmem:[#allocation6 + $0x8] sm:$0xff] }
  0x3b   :  { %809 = vmatprep.subr.mxu0 %v82_v12 }
  0x3c   :  { %810 = vmatpush3.msra.mxu0 %v82_v12  ;;  %v485_v12 = vld [vmem:[#allocation6] sm:$0xff] }
  0x3d   :  { %811 = vmatprep.subr.mxu0 %v81_v13 }
  0x3e   :  { %812 = vmatpush3.msra.mxu0 %v81_v13  ;;  %v693_v13 = vld [vmem:[%s1153_s5] ss:$0 sm:$0xff] }
  0x3f   :  { %813 = vmatprep.subr.mxu0 %v80_v14 }
  0x40   :  { %814 = vmatpush3.msra.mxu0 %v80_v14 }
  0x41   :  { %815 = vmatprep.subr.mxu0 %v79_v15 }
  0x42   :  { %816 = vmatpush3.msra.mxu0 %v79_v15 }
  0x43   :  { %817 = vmatprep.subr.mxu0 %v78_v16 }
  0x44   :  { %818 = vmatpush3.msra.mxu0 %v78_v16 }
  0x45   :  { %820 = vmatmul.mubr.f32.vlgmr.msra.gmra.mxu0 %v75_v17  ;;  %891 = vmatprep.subr.mxu0 %v500_v57 }
  0x46   :  { %822 = vmatprep.mubr.f32.mxu0 %v76_v18  ;;  %892 = vmatpush3.msra.mxu0 %v500_v57 }
  0x47   :  { %893 = vmatprep.subr.mxu0 %v499_v58 }
  0x48   :  { %894 = vmatpush3.msra.mxu0 %v499_v58 }
  0x49   :  { %823 = vmatmul.mubr.f32.gmra.mxu0 %v77_v19  ;;  %895 = vmatprep.subr.mxu0 %v498_v59 }
  0x4a   :  { %896 = vmatpush3.msra.mxu0 %v498_v59 }
  0x4b   :  { %897 = vmatprep.subr.mxu0 %v497_v60 }
  0x4c   :  { %898 = vmatpush3.msra.mxu0 %v497_v60 }
  0x4d   :  { %899 = vmatprep.subr.mxu0 %v496_v61 }
  0x4e   :  { %900 = vmatpush3.msra.mxu0 %v496_v61 }
  0x4f   :  { %901 = vmatprep.subr.mxu0 %v495_v62 }
  0x50   :  { %902 = vmatpush3.msra.mxu0 %v495_v62 }
  0x51   :  { %903 = vmatprep.subr.mxu0 %v494_v63 }
  0x52   :  { %904 = vmatpush3.msra.mxu0 %v494_v63 }
  0x53   :  { %905 = vmatprep.subr.mxu0 %v493_v0 }
  0x54   :  { %906 = vmatpush3.msra.mxu0 %v493_v0 }
  0x55   :  { %907 = vmatprep.subr.mxu0 %v492_v1 }
  0x56   :  { %908 = vmatpush3.msra.mxu0 %v492_v1 }
  0x57   :  { %909 = vmatprep.subr.mxu0 %v491_v2 }
  0x58   :  { %910 = vmatpush3.msra.mxu0 %v491_v2 }
  0x59   :  { %911 = vmatprep.subr.mxu0 %v490_v3 }
  0x5a   :  { %912 = vmatpush3.msra.mxu0 %v490_v3 }
  0x5b   :  { %913 = vmatprep.subr.mxu0 %v489_v4 }
  0x5c   :  { %914 = vmatpush3.msra.mxu0 %v489_v4 }
  0x5d   :  { %915 = vmatprep.subr.mxu0 %v488_v9 }
  0x5e   :  { %916 = vmatpush3.msra.mxu0 %v488_v9 }
  0x5f   :  { %917 = vmatprep.subr.mxu0 %v487_v10 }
  0x60   :  { %918 = vmatpush3.msra.mxu0 %v487_v10 }
  0x61   :  { %919 = vmatprep.subr.mxu0 %v486_v11 }
  0x62   :  { %920 = vmatpush3.msra.mxu0 %v486_v11 }
  0x63   :  { %921 = vmatprep.subr.mxu0 %v485_v12 }
  0x64   :  { %922 = vmatpush3.msra.mxu0 %v485_v12 }
 0x105   :  { %v821_v21 = vpop.f32.mrf.mxu0 }
 0x107   :  { %v160_v22 = vpop.f32.mrf.mxu0 }
 0x109   :  { %v824_v23 = vpop.f32.mrf.mxu0 }
 0x10a   :  { %825 = vmatprep.subr.mxu1 %v824_v23 }
 0x10b   :  { %v170_v24 = vpop.f32.mrf.mxu0  ;;  %826 = vmatpush3.msra.mxu1 %v824_v23 }
 0x10c   :  { %827 = vmatprep.subr.mxu1 %v170_v24 }
 0x10d   :  { %828 = vmatpush3.msra.mxu1 %v170_v24 }
 0x10e   :  { %829 = vmatprep.subr.mxu1 %v821_v21 }
 0x10f   :  { %830 = vmatpush3.msra.mxu1 %v821_v21 }
 0x110   :  { %831 = vmatprep.subr.mxu1 %v160_v22 }
 0x111   :  { %832 = vmatpush3.msra.mxu1 %v160_v22 }
 0x112   :  { %834 = vmatmul.mubr.msk.f32.vlgmr.msra.gmra.mxu1 %vm186_vm0, %v1093_v25  ;;  %839 = vmatprep.subr.mxu1 %v303_v26 }
 0x113   :  { %836 = vmatprep.mubr.msk.f32.mxu1 %vm186_vm0, %v1098_v27  ;;  %840 = vmatpush3.msra.mxu1 %v303_v26 }
 0x114   :  { %841 = vmatprep.subr.mxu1 %v302_v28 }
 0x115   :  { %842 = vmatpush3.msra.mxu1 %v302_v28 }
 0x116   :  { %837 = vmatmul.mubr.msk.f32.gmra.mxu1 %vm186_vm0, %v1107_v29  ;;  %843 = vmatprep.subr.mxu1 %v301_v30 }
 0x117   :  { %844 = vmatpush3.msra.mxu1 %v301_v30 }
 0x118   :  { %845 = vmatprep.subr.mxu1 %v300_v31 }
 0x119   :  { %846 = vmatpush3.msra.mxu1 %v300_v31 }
 0x11a   :  { %847 = vmatprep.subr.mxu1 %v299_v32 }
 0x11b   :  { %848 = vmatpush3.msra.mxu1 %v299_v32 }
 0x11c   :  { %849 = vmatprep.subr.mxu1 %v298_v33 }
 0x11d   :  { %850 = vmatpush3.msra.mxu1 %v298_v33  ;;  %v698_v33 = vld [vmem:[%s1155_s7] ss:$0 sm:$0xff] }
 0x11e   :  { %851 = vmatprep.subr.mxu1 %v297_v34 }
 0x11f   :  { %852 = vmatpush3.msra.mxu1 %v297_v34 }
 0x120   :  { %853 = vmatprep.subr.mxu1 %v296_v35 }
 0x121   :  { %854 = vmatpush3.msra.mxu1 %v296_v35 }
 0x122   :  { %855 = vmatprep.subr.mxu1 %v295_v36 }
 0x123   :  { %856 = vmatpush3.msra.mxu1 %v295_v36 }
 0x124   :  { %857 = vmatprep.subr.mxu1 %v294_v37 }
 0x125   :  { %858 = vmatpush3.msra.mxu1 %v294_v37 }
 0x126   :  { %859 = vmatprep.subr.mxu1 %v293_v38 }
 0x127   :  { %860 = vmatpush3.msra.mxu1 %v293_v38 }
 0x128   :  { %861 = vmatprep.subr.mxu1 %v292_v39 }
 0x129   :  { %862 = vmatpush3.msra.mxu1 %v292_v39 }
 0x12a   :  { %863 = vmatprep.subr.mxu1 %v291_v40 }
 0x12b   :  { %864 = vmatpush3.msra.mxu1 %v291_v40 }
 0x12c   :  { %865 = vmatprep.subr.mxu1 %v290_v41 }
 0x12d   :  { %866 = vmatpush3.msra.mxu1 %v290_v41 }
 0x12e   :  { %867 = vmatprep.subr.mxu1 %v289_v42 }
 0x12f   :  { %868 = vmatpush3.msra.mxu1 %v289_v42 }
 0x130   :  { %869 = vmatprep.subr.mxu1 %v288_v43 }
 0x131   :  { %870 = vmatpush3.msra.mxu1 %v288_v43 }
 0x1d2   :  { %v835_v45 = vpop.f32.mrf.mxu1 }
 0x1d3   :  { %v271_v46 = vadd.f32 %v835_v45, %v688_v44 }
 0x1d4   :  { %v265_v47 = vpop.f32.mrf.mxu1 }
 0x1d5   :  { %v266_v48 = vadd.f32 %v688_v44, %v265_v47  ;;  %v285_v51 = vmax.f32 %v271_v46, 0.0 }
 0x1d6   :  { %v838_v49 = vpop.f32.mrf.mxu1 }
 0x1d7   :  { %v284_v50 = vmax.f32 %v266_v48, 0.0  ;;  %v281_v52 = vadd.f32 %v838_v49, %v688_v44 }
 0x1d8   :  { %v275_v53 = vpop.f32.mrf.mxu1 }
 0x1d9   :  { %v276_v54 = vadd.f32 %v688_v44, %v275_v53  ;;  %871 = vmatprep.mubr.f32.mxu1 %v284_v50  ;;  %v287_v56 = vmax.f32 %v281_v52, 0.0 }
 0x1da   :  { %872 = vmatmul.mubr.f32.vlgmr.msra.gmra.mxu1 %v285_v51 }
 0x1db   :  { %v286_v55 = vmax.f32 %v276_v54, 0.0 }
 0x1dd   :  { %874 = vmatprep.mubr.f32.mxu1 %v286_v55 }
 0x1de   :  { %875 = vmatmul.mubr.f32.gmra.mxu1 %v287_v56 }
 0x1df   :  { %885 = vmatprep.mubr.msk.f32.mxu1 %vm186_vm0, %v1086_v20 }
 0x29a   :  { %v873_v5 = vpop.f32.mrf.mxu1 }
 0x29c   :  { %v370_v6 = vpop.f32.mrf.mxu1 }
 0x29e   :  { %v876_v7 = vpop.f32.mrf.mxu1 }
 0x29f   :  { %877 = vmatprep.subr.mxu1 %v876_v7 }
 0x2a0   :  { %v380_v8 = vpop.f32.mrf.mxu1  ;;  %878 = vmatpush3.msra.mxu1 %v876_v7 }
 0x2a1   :  { %879 = vmatprep.subr.mxu1 %v380_v8 }
 0x2a2   :  { %880 = vmatpush3.msra.mxu1 %v380_v8 }
 0x2a3   :  { %881 = vmatprep.subr.mxu1 %v873_v5 }
 0x2a4   :  { %882 = vmatpush3.msra.mxu1 %v873_v5 }
 0x2a5   :  { %883 = vmatprep.subr.mxu1 %v370_v6 }
 0x2a6   :  { %884 = vmatpush3.msra.mxu1 %v370_v6 }
 0x2a7   :  { %886 = vmatmul.mubr.msk.f32.vlgmr.msra.gmra.mxu1 %vm186_vm0, %v1093_v25 }
 0x2a8   :  { %888 = vmatprep.mubr.msk.f32.mxu1 %vm186_vm0, %v1098_v27 }
 0x2ab   :  { %889 = vmatmul.mubr.msk.f32.gmra.mxu1 %vm186_vm0, %v1107_v29 }
 0x2ac   :  { %937 = vmatprep.mubr.msk.f32.mxu1 %vm186_vm0, %v1086_v20 }
 0x367   :  { %v887_v14 = vpop.f32.mrf.mxu1 }
 0x368   :  { %v468_v15 = vadd.f32 %v887_v14, %v693_v13 }
 0x369   :  { %v462_v16 = vpop.f32.mrf.mxu1 }
 0x36a   :  { %v463_v17 = vadd.f32 %v693_v13, %v462_v16  ;;  %v482_v20 = vmax.f32 %v468_v15, 0.0 }
 0x36b   :  { %v890_v18 = vpop.f32.mrf.mxu1 }
 0x36c   :  { %v481_v19 = vmax.f32 %v463_v17, 0.0  ;;  %v478_v21 = vadd.f32 %v890_v18, %v693_v13 }
 0x36d   :  { %v472_v22 = vpop.f32.mrf.mxu1 }
 0x36e   :  { %v473_v23 = vadd.f32 %v693_v13, %v472_v22  ;;  %923 = vmatprep.mubr.f32.mxu0 %v481_v19  ;;  %v484_v26 = vmax.f32 %v478_v21, 0.0 }
 0x36f   :  { %924 = vmatmul.mubr.f32.vlgmr.msra.gmra.mxu0 %v482_v20 }
 0x370   :  { %v483_v24 = vmax.f32 %v473_v23, 0.0 }
 0x372   :  { %926 = vmatprep.mubr.f32.mxu0 %v483_v24 }
 0x373   :  { %927 = vmatmul.mubr.f32.gmra.mxu0 %v484_v26 }
 0x42f   :  { %v925_v28 = vpop.f32.mrf.mxu0 }
 0x431   :  { %v567_v30 = vpop.f32.mrf.mxu0 }
 0x433   :  { %v928_v31 = vpop.f32.mrf.mxu0 }
 0x434   :  { %929 = vmatprep.subr.mxu1 %v928_v31 }
 0x435   :  { %v577_v32 = vpop.f32.mrf.mxu0  ;;  %930 = vmatpush3.msra.mxu1 %v928_v31 }
 0x436   :  { %931 = vmatprep.subr.mxu1 %v577_v32 }
 0x437   :  { %932 = vmatpush3.msra.mxu1 %v577_v32 }
 0x438   :  { %933 = vmatprep.subr.mxu1 %v925_v28 }
 0x439   :  { %934 = vmatpush3.msra.mxu1 %v925_v28 }
 0x43a   :  { %935 = vmatprep.subr.mxu1 %v567_v30 }
 0x43b   :  { %936 = vmatpush3.msra.mxu1 %v567_v30 }
 0x43c   :  { %938 = vmatmul.mubr.msk.f32.vlgmr.msra.gmra.mxu1 %vm186_vm0, %v1093_v25 }
 0x43d   :  { %940 = vmatprep.mubr.msk.f32.mxu1 %vm186_vm0, %v1098_v27 }
 0x440   :  { %941 = vmatmul.mubr.msk.f32.gmra.mxu1 %vm186_vm0, %v1107_v29 }
 0x4fc   :  { %v939_v34 = vpop.f32.mrf.mxu1 }
 0x4fd   :  { %v665_v35 = vadd.f32 %v939_v34, %v698_v33 }
 0x4fe   :  { %v659_v36 = vpop.f32.mrf.mxu1 }
 0x4ff   :  { %679 = vst [vmem:[%s1156_s8 + $0x8] sm:$0xff] %v665_v35  ;;  %v660_v37 = vadd.f32 %v698_v33, %v659_v36 }
 0x500   :  { %v942_v38 = vpop.f32.mrf.mxu1 }
 0x501   :  { %678 = vst [vmem:[%s1156_s8] sm:$0xff] %v660_v37  ;;  %v675_v25 = vadd.f32 %v942_v38, %v698_v33 }
 0x502   :  { %v669_v27 = vpop.f32.mrf.mxu1 }
 0x503   :  { %681 = vst [vmem:[%s1156_s8 + $0x18] sm:$0xff] %v675_v25  ;;  %v670_v29 = vadd.f32 %v698_v33, %v669_v27 }
 0x505   :  { %680 = vst [vmem:[%s1156_s8 + $0x10] sm:$0xff] %v670_v29 }
 0x506   :  { %686 = vsyncpa [#allocation3], 1 }
 0x507   :  { %687 = vsyncpa [#allocation5], 1 }

</bundles_post_ra>
